<compile_context>
chip_gen: v7x
topology: tpu7x:2x2x1
jax: 0.10.0
libtpu: 0.0.40
codegen_flags: <defaults>
</compile_context>

<pallas_src>
import functools

import jax
import jax.numpy as jnp
from jax.experimental import pallas as pl
from jax.experimental.pallas import tpu as pltpu


# ----------------------------------------------------------------------------
# Kernel helpers
# ----------------------------------------------------------------------------
def _tile_argmax(logits, fill):
    """First-maximal-index argmax of a (B, T) tile -> ((B,1) max, (B,1) idx)."""
    tile_max = jnp.max(logits, axis=-1, keepdims=True)
    lane = jax.lax.broadcasted_iota(jnp.int32, logits.shape, 1)
    cand = jnp.where(logits >= tile_max, lane, fill)        # >= + min => first max
    return tile_max, jnp.min(cand, axis=-1, keepdims=True)


# ----------------------------------------------------------------------------
# Kernels
# ----------------------------------------------------------------------------
def _ensemble_avg_kernel(h_ref, w_ref, b_ref, val_ref, idx_ref, *,
                         tile_v, v_split):
    """method='avg': argmax softmax((l1+l2)/2) == argmax(l1+l2) (monotone).

    grid = (num_splits [parallel], tiles_per_split [arbitrary]).  The per-split
    running (best value, best index) live directly in the split's output block
    (resident across the arbitrary axis); the tiny cross-split merge happens in
    the JAX wrapper.
    """
    s = pl.program_id(0)
    j = pl.program_id(1)

    @pl.when(j == 0)
    def _():
        val_ref[0] = jnp.full(val_ref.shape[1:], -jnp.inf, jnp.float32)
        idx_ref[0] = jnp.zeros(idx_ref.shape[1:], jnp.int32)

    # h is pre-concatenated [B, 2H], w is [2H, tile_v]: one MXU push = l1 + l2.
    logits = jnp.dot(h_ref[...], w_ref[...], preferred_element_type=jnp.float32)
    logits = logits + (b_ref[0:1, :] + b_ref[1:2, :])

    tile_max, tile_arg = _tile_argmax(logits, tile_v)
    tile_arg = tile_arg + (s * v_split + j * tile_v)

    take = tile_max > val_ref[0]                 # strict >: earlier tile wins ties
    idx_ref[0] = jnp.where(take, tile_arg, idx_ref[0])
    val_ref[0] = jnp.where(take, tile_max, val_ref[0])


def _ensemble_max_kernel(h_ref, w_ref, b_ref,
                         ma_ref, ia_ref, sa_ref, mb_ref, ib_ref, sb_ref,
                         *, hidden, tile_v, v_split):
    """method='max': argmax(max(softmax(l1), softmax(l2))), fully online.

    Per model, per split: flash-style running (row max m, first-maximal index i,
    rescaled exp-sum s).  No probabilities, no full-V scratch, no reciprocal —
    the model with the smaller final S wins (its peak probability is 1/S).
    """
    sp = pl.program_id(0)
    j = pl.program_id(1)

    @pl.when(j == 0)
    def _():
        for m_r, i_r, s_r in ((ma_ref, ia_ref, sa_ref), (mb_ref, ib_ref, sb_ref)):
            m_r[0] = jnp.full(m_r.shape[1:], -jnp.inf, jnp.float32)
            i_r[0] = jnp.zeros(i_r.shape[1:], jnp.int32)
            s_r[0] = jnp.zeros(s_r.shape[1:], jnp.float32)

    base = sp * v_split + j * tile_v

    def update(h, w, b_row, m_r, i_r, s_r):
        l = jnp.dot(h, w, preferred_element_type=jnp.float32) + b_row
        tile_max, tile_arg = _tile_argmax(l, tile_v)
        tile_arg = tile_arg + base
        m_old = m_r[0]
        m_new = jnp.maximum(m_old, tile_max)
        # Padded vocab columns carry bias -1e30 -> their exp underflows to 0.
        s_r[0] = (s_r[0] * jnp.exp(m_old - m_new)
                  + jnp.sum(jnp.exp(l - m_new), axis=-1, keepdims=True))
        take = tile_max > m_old                  # strict >: earlier tile wins ties
        i_r[0] = jnp.where(take, tile_arg, i_r[0])
        m_r[0] = m_new

    update(h_ref[0], w_ref[:hidden, :], b_ref[0:1, :], ma_ref, ia_ref, sa_ref)
    update(h_ref[1], w_ref[hidden:, :], b_ref[1:2, :], mb_ref, ib_ref, sb_ref)


# ----------------------------------------------------------------------------
# Tile / VMEM sizing (generation-aware)
# ----------------------------------------------------------------------------
def _choose_tile_v(hidden, vocab, num_splits, *, weight_buf_bytes=32 << 20,
                   max_tile=4096):
    """Largest 128-multiple vocab tile whose DOUBLE-BUFFERED bf16 [2H, tile_v]
    weight slab fits `weight_buf_bytes`, capped at max_tile and the per-split
    vocab span."""
    per_col = 2 * (2 * hidden) * 2               # 2 buffers x 2H rows x bf16
    t = (weight_buf_bytes // per_col) // 128 * 128
    span = -(-vocab // (num_splits * 128)) * 128  # ceil(vocab/splits) to 128
    return int(max(128, min(t, max_tile, span)))


def _vmem_limit_bytes(hidden, tile_v, b_pad):
    """Actual footprint (+25% & 4 MiB headroom), clamped to the chip's VMEM."""
    need = 2 * ((2 * hidden) * tile_v * 2 + 2 * tile_v * 4)   # dbl-buffered w + b
    need += b_pad * (2 * hidden) * 2                          # resident hidden states
    need += 4 * b_pad * tile_v * 4                            # logits / exp temporaries
    need += 16 * b_pad * 4                                    # per-split stat outputs
    need = need + need // 4 + (4 << 20)
    try:     # 128 MiB on v5e/v6e, 64 MiB on v7x
        cap = int(pltpu.get_tpu_info().vmem_capacity_bytes)
    except Exception:
        cap = 64 << 20
    return int(min(max(need, 16 << 20), max(cap - (16 << 20), 16 << 20)))


# ----------------------------------------------------------------------------
# Pallas wrapper
# ----------------------------------------------------------------------------
def ensemble_step(h, w, b, *, method="max", tile_v=512, num_splits=2):
    """h: [2,B,H] bf16; w: [2H, V_pad] bf16 (models stacked along contraction);
    b: [2, V_pad] f32 (padded columns = -1e30).

    Returns [B,1] int32 argmax token ids of the ensembled distribution."""
    K, B, H = h.shape
    V_pad = w.shape[-1]
    assert K == 2 and w.shape == (2 * H, V_pad) and b.shape == (2, V_pad)
    assert H % 8 == 0, "hidden must be a sublane multiple for the weight split"
    assert tile_v % 128 == 0 and V_pad % (num_splits * tile_v) == 0
    tiles_per_split = V_pad // (num_splits * tile_v)
    v_split = tiles_per_split * tile_v

    # Pad batch to the 8-sublane multiple (tiny, keeps layouts clean).
    B_pad = ((B + 7) // 8) * 8
    h_p = h if B == B_pad else jnp.zeros((2, B_pad, H), h.dtype).at[:, :B, :].set(h)

    w_spec = pl.BlockSpec((2 * H, tile_v), lambda s, j: (0, s * tiles_per_split + j))
    b_spec = pl.BlockSpec((2, tile_v), lambda s, j: (0, s * tiles_per_split + j))
    stat_spec = pl.BlockSpec((1, B_pad, 1), lambda s, j: (s, 0, 0))
    stat_f32 = jax.ShapeDtypeStruct((num_splits, B_pad, 1), jnp.float32)
    stat_i32 = jax.ShapeDtypeStruct((num_splits, B_pad, 1), jnp.int32)

    if method == "avg":
        h_in = jnp.concatenate([h_p[0], h_p[1]], axis=-1)             # [B_pad, 2H]
        h_spec = pl.BlockSpec((B_pad, 2 * H), lambda s, j: (0, 0))
        kernel = functools.partial(_ensemble_avg_kernel, tile_v=tile_v,
                                   v_split=v_split)
        out_shape = (stat_f32, stat_i32)
        out_specs = (stat_spec, stat_spec)
        transcendentals = 0
    elif method == "max":
        h_in = h_p                                                    # [2, B_pad, H]
        h_spec = pl.BlockSpec((2, B_pad, H), lambda s, j: (0, 0, 0))
        kernel = functools.partial(_ensemble_max_kernel, hidden=H,
                                   tile_v=tile_v, v_split=v_split)
        out_shape = (stat_f32, stat_i32, stat_f32, stat_f32, stat_i32, stat_f32)
        out_specs = (stat_spec,) * 6
        transcendentals = 2 * B_pad * V_pad
    else:
        # TODO(synk): 'dropout'/'pertub' require re-running the external models.
        raise ValueError(f"unsupported ensemble_method: {method}")

    cost = pl.CostEstimate(
        flops=2 * B_pad * (2 * H) * V_pad,
        transcendentals=transcendentals,
        bytes_accessed=(w.size * w.dtype.itemsize + b.size * b.dtype.itemsize
                        + h_in.size * h_in.dtype.itemsize
                        + len(out_shape) * num_splits * B_pad * 4),
    )

    outs = pl.pallas_call(
        kernel,
        out_shape=out_shape,
        grid_spec=pltpu.PrefetchScalarGridSpec(
            num_scalar_prefetch=0,
            grid=(num_splits, tiles_per_split),
            in_specs=[h_spec, w_spec, b_spec],
            out_specs=out_specs),
        compiler_params=pltpu.CompilerParams(
            # Leading vocab-split axis is parallel -> v7x shards it across both
            # TensorCores; the per-split tile loop is the reduction axis.
            dimension_semantics=("parallel", "arbitrary"),
            vmem_limit_bytes=_vmem_limit_bytes(H, tile_v, B_pad)),
        cost_estimate=cost,
    )(h_in, w, b)

    # --- tiny cross-split merge (O(num_splits * B)) in plain JAX -------------
    if method == "avg":
        vals, idxs = [o[:, :B, 0] for o in outs]                      # [S, B] each
        best_v, best_i = vals[0], idxs[0]
        for s in range(1, num_splits):
            take = vals[s] > best_v              # strict: lower split wins ties
            best_i = jnp.where(take, idxs[s], best_i)
            best_v = jnp.where(take, vals[s], best_v)
        return best_i[:, None]

    ma, ia, sa, mb, ib, sb = [o[:, :B, 0] for o in outs]              # [S, B] each

    def merge(m, i, s_sum):
        mm, ii, ss = m[0], i[0], s_sum[0]
        for s in range(1, num_splits):
            m_new = jnp.maximum(mm, m[s])
            ss = ss * jnp.exp(mm - m_new) + s_sum[s] * jnp.exp(m[s] - m_new)
            ii = jnp.where(m[s] > mm, i[s], ii)  # strict: lower split wins ties
            mm = m_new
        return ii, ss

    i1, s1 = merge(ma, ia, sa)
    i2, s2 = merge(mb, ib, sb)
    # Peak merged probability of model k is 1/S_k -> smaller S wins; exact tie
    # -> first (smaller) index, matching torch.max / jnp.argmax semantics.
    tok = jnp.where(s1 < s2, i1, jnp.where(s2 < s1, i2, jnp.minimum(i1, i2)))
    return tok[:, None]


# ----------------------------------------------------------------------------
# Synthetic parameters (stand-in for model1 / model2) + glue forward
# ----------------------------------------------------------------------------
def make_params(key, n_mels, hidden, vocab, *, tile_v=None, num_splits=2):
    """Deterministic synthetic parameters.  The two vocab projections are
    concatenated along the contracting dim into ONE [2H, V_pad] bf16 slab and
    padded ONCE here (outside the decode loop) to a multiple of
    num_splits * tile_v.  Padded bias columns are -1e30 so they never win the
    argmax and their exp underflows to 0 in the online softmax sums."""
    def one_model(k):
        k1, k2, k3 = jax.random.split(k, 3)
        return {
            "embed": 0.1 * jax.random.normal(k1, (vocab, hidden), jnp.float32),
            "w_enc": 0.1 * jax.random.normal(k2, (n_mels, hidden), jnp.float32),
            "w_out": (0.1 * jax.random.normal(k3, (hidden, vocab), jnp.float32)
                      ).astype(jnp.bfloat16),
            "b_out": jnp.zeros((vocab,), jnp.float32),
        }

    ka, kb = jax.random.split(key)
    m1, m2 = one_model(ka), one_model(kb)

    if tile_v is None:
        tile_v = _choose_tile_v(hidden, vocab, num_splits)
    else:
        tile_v = max(128, (tile_v // 128) * 128)
    chunk = num_splits * tile_v
    v_pad = ((vocab + chunk - 1) // chunk) * chunk

    w = jnp.concatenate([m1["w_out"], m2["w_out"]], axis=0)           # [2H, V] bf16
    b = jnp.stack([m1["b_out"], m2["b_out"]])                         # [2, V] f32
    w_pad = jnp.zeros((2 * hidden, v_pad), jnp.bfloat16).at[:, :vocab].set(w)
    b_pad = jnp.full((2, v_pad), -1e30, jnp.float32).at[:, :vocab].set(b)

    params = {
        "m1": {"embed": m1["embed"], "w_enc": m1["w_enc"]},
        "m2": {"embed": m2["embed"], "w_enc": m2["w_enc"]},
        "w_out": w_pad,
        "b_out": b_pad,
    }
    return params, tile_v


def _hidden_states(input_features, attention_mask, decoder_input_ids, params):
    """Glue: synthetic per-model hidden states (stand-in for model1/model2)."""
    mask = attention_mask[:, None, :].astype(jnp.float32)             # [B,1,T]
    denom = jnp.maximum(jnp.sum(mask, axis=-1), 1.0)                  # [B,1]
    enc_feat = jnp.sum(input_features * mask, axis=-1) / denom        # [B,n_mels]
    last_tok = decoder_input_ids[:, -1]                               # [B]

    def hidden(p):
        return jnp.tanh(p["embed"][last_tok] + enc_feat @ p["w_enc"])

    return jnp.stack([hidden(params["m1"]),
                      hidden(params["m2"])]).astype(jnp.bfloat16)     # [2,B,H]


def asr_ensemble_forward(input_features, attention_mask, decoder_input_ids,
                         params, *, ensemble_method="max", eos_token_id=2,
                         tile_v=512, num_splits=2):
    """Mirrors ASREnsembleModel.forward: (new decoder_input_ids, is_terminate)."""
    batch_size = input_features.shape[0]
    h = _hidden_states(input_features, attention_mask, decoder_input_ids, params)

    new_token_id = ensemble_step(h, params["w_out"], params["b_out"],
                                 method=ensemble_method, tile_v=tile_v,
                                 num_splits=num_splits)
    new_token_id = new_token_id.astype(decoder_input_ids.dtype)       # [B,1]
    decoder_input_ids = jnp.concatenate([decoder_input_ids, new_token_id],
                                        axis=-1)

    # count_seq_end: number of sequences containing the EOS token.
    seq_end_count = jnp.sum(
        jnp.any(decoder_input_ids == eos_token_id, axis=-1).astype(jnp.int32))
    return decoder_input_ids, seq_end_count == batch_size


def asr_ensemble_forward_ref(input_features, attention_mask, decoder_input_ids,
                             params, *, ensemble_method="max", eos_token_id=2):
    """Pure-JAX reference (faithful to the PyTorch merge semantics)."""
    batch_size = input_features.shape[0]
    h = _hidden_states(input_features, attention_mask, decoder_input_ids, params)
    H = h.shape[-1]
    w, b = params["w_out"], params["b_out"]
    l1 = jnp.dot(h[0], w[:H], preferred_element_type=jnp.float32) + b[0]
    l2 = jnp.dot(h[1], w[H:], preferred_element_type=jnp.float32) + b[1]
    if ensemble_method == "max":
        merged = jnp.maximum(jax.nn.softmax(l1, axis=-1),
                             jax.nn.softmax(l2, axis=-1))
    elif ensemble_method == "avg":
        merged = jax.nn.softmax((l1 + l2) * 0.5, axis=-1)
    else:
        raise ValueError(ensemble_method)
    new_token_id = jnp.argmax(merged, axis=-1)[:, None].astype(
        decoder_input_ids.dtype)
    decoder_input_ids = jnp.concatenate([decoder_input_ids, new_token_id],
                                        axis=-1)
    seq_end_count = jnp.sum(
        jnp.any(decoder_input_ids == eos_token_id, axis=-1).astype(jnp.int32))
    return decoder_input_ids, seq_end_count == batch_size


# ----------------------------------------------------------------------------
if __name__ == "__main__":
    B, N_MELS, T, SEQ, HIDDEN, VOCAB = 2, 4, 16, 8, 32, 1000
    EOS = 2
    NUM_SPLITS = 2    # vocab halves -> both v7x TensorCores stream disjoint weights

    key = jax.random.PRNGKey(0)
    k_feat, k_ids, k_params = jax.random.split(key, 3)

    input_features = jax.random.normal(k_feat, (B, N_MELS, T), jnp.float32)
    attention_mask = jnp.ones((B, T), jnp.int32)
    decoder_input_ids = jax.random.randint(k_ids, (B, SEQ), 0, VOCAB,
                                           dtype=jnp.int32)

    params, tile_v = make_params(k_params, N_MELS, HIDDEN, VOCAB,
                                 num_splits=NUM_SPLITS)

    for method in ("max", "avg"):
        fwd = jax.jit(functools.partial(asr_ensemble_forward,
                                        ensemble_method=method,
                                        eos_token_id=EOS,
                                        tile_v=tile_v,
                                        num_splits=NUM_SPLITS))
        new_ids, is_terminate = fwd(input_features, attention_mask,
                                    decoder_input_ids, params)
        jax.block_until_ready((new_ids, is_terminate))

        ref_ids, ref_term = asr_ensemble_forward_ref(
            input_features, attention_mask, decoder_input_ids, params,
            ensemble_method=method, eos_token_id=EOS)

        assert new_ids.shape == (B, SEQ + 1)
        assert new_ids.dtype == decoder_input_ids.dtype
        assert bool(jnp.all(new_ids == ref_ids)), f"token mismatch ({method})"
        assert bool(is_terminate) == bool(ref_term)

    print("KERNEL_OK")
</pallas_src>

<mosaic_0001>
module attributes {stable_mosaic.version = 11 : i64} {
  func.func @_ensemble_max_kernel(%arg0: i32, %arg1: i32, %arg2: memref<2x8x32xbf16, #tpu.memory_space<vmem>>, %arg3: memref<64x512xbf16, #tpu.memory_space<vmem>>, %arg4: memref<2x512xf32, #tpu.memory_space<vmem>>, %arg5: memref<1x8x1xf32, #tpu.memory_space<vmem>>, %arg6: memref<1x8x1xi32, #tpu.memory_space<vmem>>, %arg7: memref<1x8x1xf32, #tpu.memory_space<vmem>>, %arg8: memref<1x8x1xf32, #tpu.memory_space<vmem>>, %arg9: memref<1x8x1xi32, #tpu.memory_space<vmem>>, %arg10: memref<1x8x1xf32, #tpu.memory_space<vmem>>) attributes {dimension_semantics = [#tpu.dimension_semantics<parallel>, #tpu.dimension_semantics<arbitrary>], iteration_bounds = array<i64: 2, 1>, scalar_prefetch = 0 : i64, scratch_operands = 0 : i64, tpu.core_type = #tpu.core_type<tc>, window_params = [{pipeline_mode = #tpu.pipeline_mode<synchronous>, transform_indices = @transform_0, window_bounds = array<i64: 2, 8, 32>}, {transform_indices = @transform_1, window_bounds = array<i64: 64, 512>}, {transform_indices = @transform_2, window_bounds = array<i64: 2, 512>}, {transform_indices = @transform_3, window_bounds = array<i64: 1, 8, 1>}, {transform_indices = @transform_4, window_bounds = array<i64: 1, 8, 1>}, {transform_indices = @transform_5, window_bounds = array<i64: 1, 8, 1>}, {transform_indices = @transform_6, window_bounds = array<i64: 1, 8, 1>}, {transform_indices = @transform_7, window_bounds = array<i64: 1, 8, 1>}, {transform_indices = @transform_8, window_bounds = array<i64: 1, 8, 1>}]} {
    %c0_i32 = arith.constant 0 : i32
    %0 = arith.cmpi eq, %arg1, %c0_i32 : i32
    %1 = arith.extui %0 : i1 to i32
    %c0_i32_0 = arith.constant 0 : i32
    %2 = arith.cmpi ne, %1, %c0_i32_0 : i32
    scf.if %2 {
      %cst_58 = arith.constant 0xFF800000 : f32
      %96 = vector.broadcast %cst_58 : f32 to vector<8x1xf32>
      %c0_59 = arith.constant 0 : index
      %c0_60 = arith.constant 0 : index
      %c0_61 = arith.constant 0 : index
      %97 = vector.load %arg5[%c0_59, %c0_60, %c0_61] : memref<1x8x1xf32, #tpu.memory_space<vmem>>, vector<1x8x1xf32>
      %98 = vector.shape_cast %97 : vector<1x8x1xf32> to vector<8x1xf32>
      %99 = vector.shape_cast %96 : vector<8x1xf32> to vector<1x8x1xf32>
      tpu.vector_store %arg5[%c0_59, %c0_60, %c0_61], %99 {strides = array<i32>} : memref<1x8x1xf32, #tpu.memory_space<vmem>>, vector<1x8x1xf32>,
      %c0_i32_62 = arith.constant 0 : i32
      %100 = vector.broadcast %c0_i32_62 : i32 to vector<8x1xi32>
      %c0_63 = arith.constant 0 : index
      %c0_64 = arith.constant 0 : index
      %c0_65 = arith.constant 0 : index
      %101 = vector.load %arg6[%c0_63, %c0_64, %c0_65] : memref<1x8x1xi32, #tpu.memory_space<vmem>>, vector<1x8x1xi32>
      %102 = vector.shape_cast %101 : vector<1x8x1xi32> to vector<8x1xi32>
      %103 = vector.shape_cast %100 : vector<8x1xi32> to vector<1x8x1xi32>
      tpu.vector_store %arg6[%c0_63, %c0_64, %c0_65], %103 {strides = array<i32>} : memref<1x8x1xi32, #tpu.memory_space<vmem>>, vector<1x8x1xi32>,
      %cst_66 = arith.constant 0.000000e+00 : f32
      %104 = vector.broadcast %cst_66 : f32 to vector<8x1xf32>
      %c0_67 = arith.constant 0 : index
      %c0_68 = arith.constant 0 : index
      %c0_69 = arith.constant 0 : index
      %105 = vector.load %arg7[%c0_67, %c0_68, %c0_69] : memref<1x8x1xf32, #tpu.memory_space<vmem>>, vector<1x8x1xf32>
      %106 = vector.shape_cast %105 : vector<1x8x1xf32> to vector<8x1xf32>
      %107 = vector.shape_cast %104 : vector<8x1xf32> to vector<1x8x1xf32>
      tpu.vector_store %arg7[%c0_67, %c0_68, %c0_69], %107 {strides = array<i32>} : memref<1x8x1xf32, #tpu.memory_space<vmem>>, vector<1x8x1xf32>,
      %cst_70 = arith.constant 0xFF800000 : f32
      %108 = vector.broadcast %cst_70 : f32 to vector<8x1xf32>
      %c0_71 = arith.constant 0 : index
      %c0_72 = arith.constant 0 : index
      %c0_73 = arith.constant 0 : index
      %109 = vector.load %arg8[%c0_71, %c0_72, %c0_73] : memref<1x8x1xf32, #tpu.memory_space<vmem>>, vector<1x8x1xf32>
      %110 = vector.shape_cast %109 : vector<1x8x1xf32> to vector<8x1xf32>
      %111 = vector.shape_cast %108 : vector<8x1xf32> to vector<1x8x1xf32>
      tpu.vector_store %arg8[%c0_71, %c0_72, %c0_73], %111 {strides = array<i32>} : memref<1x8x1xf32, #tpu.memory_space<vmem>>, vector<1x8x1xf32>,
      %c0_i32_74 = arith.constant 0 : i32
      %112 = vector.broadcast %c0_i32_74 : i32 to vector<8x1xi32>
      %c0_75 = arith.constant 0 : index
      %c0_76 = arith.constant 0 : index
      %c0_77 = arith.constant 0 : index
      %113 = vector.load %arg9[%c0_75, %c0_76, %c0_77] : memref<1x8x1xi32, #tpu.memory_space<vmem>>, vector<1x8x1xi32>
      %114 = vector.shape_cast %113 : vector<1x8x1xi32> to vector<8x1xi32>
      %115 = vector.shape_cast %112 : vector<8x1xi32> to vector<1x8x1xi32>
      tpu.vector_store %arg9[%c0_75, %c0_76, %c0_77], %115 {strides = array<i32>} : memref<1x8x1xi32, #tpu.memory_space<vmem>>, vector<1x8x1xi32>,
      %cst_78 = arith.constant 0.000000e+00 : f32
      %116 = vector.broadcast %cst_78 : f32 to vector<8x1xf32>
      %c0_79 = arith.constant 0 : index
      %c0_80 = arith.constant 0 : index
      %c0_81 = arith.constant 0 : index
      %117 = vector.load %arg10[%c0_79, %c0_80, %c0_81] : memref<1x8x1xf32, #tpu.memory_space<vmem>>, vector<1x8x1xf32>
      %118 = vector.shape_cast %117 : vector<1x8x1xf32> to vector<8x1xf32>
      %119 = vector.shape_cast %116 : vector<8x1xf32> to vector<1x8x1xf32>
      tpu.vector_store %arg10[%c0_79, %c0_80, %c0_81], %119 {strides = array<i32>} : memref<1x8x1xf32, #tpu.memory_space<vmem>>, vector<1x8x1xf32>,
    } else {
    }
    %c512_i32 = arith.constant 512 : i32
    %3 = arith.muli %arg0, %c512_i32 : i32
    %c512_i32_1 = arith.constant 512 : i32
    %4 = arith.muli %arg1, %c512_i32_1 : i32
    %5 = arith.addi %3, %4 : i32
    %c0 = arith.constant 0 : index
    %c0_2 = arith.constant 0 : index
    %c0_3 = arith.constant 0 : index
    %6 = vector.load %arg2[%c0, %c0_2, %c0_3] : memref<2x8x32xbf16, #tpu.memory_space<vmem>>, vector<1x8x32xbf16>
    %7 = vector.shape_cast %6 : vector<1x8x32xbf16> to vector<8x32xbf16>
    %c0_4 = arith.constant 0 : index
    %c0_5 = arith.constant 0 : index
    %8 = vector.load %arg3[%c0_4, %c0_5] : memref<64x512xbf16, #tpu.memory_space<vmem>>, vector<32x512xbf16>
    %c0_6 = arith.constant 0 : index
    %c0_7 = arith.constant 0 : index
    %9 = vector.load %arg4[%c0_6, %c0_7] : memref<2x512xf32, #tpu.memory_space<vmem>>, vector<1x512xf32>
    %cst = arith.constant dense<0.000000e+00> : vector<8x512xf32>
    %10 = tpu.matmul %7, %8, %cst {dimension_numbers = #tpu.dot_dimension_numbers<[1], [0], [0], [1], [0, 0, 1, 1], [], []>} : vector<8x32xbf16>, vector<32x512xbf16>, vector<8x512xf32> -> vector<8x512xf32>
    %11 = vector.broadcast %9 : vector<1x512xf32> to vector<8x512xf32>
    %12 = arith.addf %10, %11 : vector<8x512xf32>
    %cst_8 = arith.constant dense<0xFF800000> : vector<8xf32>
    %13 = vector.multi_reduction <maximumf>, %12, %cst_8 [1] : vector<8x512xf32> to vector<8xf32>
    %14 = vector.shape_cast %13 : vector<8xf32> to vector<8x1xf32>
    %15 = tpu.iota {dimensions = array<i32: 1>} : vector<8x512xi32>
    %16 = vector.broadcast %14 : vector<8x1xf32> to vector<8x512xf32>
    %17 = arith.cmpf oge, %12, %16 : vector<8x512xf32>
    %c512_i32_9 = arith.constant 512 : i32
    %18 = vector.broadcast %c512_i32_9 : i32 to vector<8x512xi32>
    %19 = arith.select %17, %15, %18 : vector<8x512xi1>, vector<8x512xi32>
    %cst_10 = arith.constant dense<2147483647> : vector<8xi32>
    %20 = vector.multi_reduction <minsi>, %19, %cst_10 [1] : vector<8x512xi32> to vector<8xi32>
    %21 = vector.shape_cast %20 : vector<8xi32> to vector<8x1xi32>
    %22 = vector.broadcast %5 : i32 to vector<8x1xi32>
    %23 = arith.addi %21, %22 : vector<8x1xi32>
    %c0_11 = arith.constant 0 : index
    %c0_12 = arith.constant 0 : index
    %c0_13 = arith.constant 0 : index
    %24 = vector.load %arg5[%c0_11, %c0_12, %c0_13] : memref<1x8x1xf32, #tpu.memory_space<vmem>>, vector<1x8x1xf32>
    %25 = vector.shape_cast %24 : vector<1x8x1xf32> to vector<8x1xf32>
    %26 = arith.maximumf %25, %14 : vector<8x1xf32>
    %c0_14 = arith.constant 0 : index
    %c0_15 = arith.constant 0 : index
    %c0_16 = arith.constant 0 : index
    %27 = vector.load %arg7[%c0_14, %c0_15, %c0_16] : memref<1x8x1xf32, #tpu.memory_space<vmem>>, vector<1x8x1xf32>
    %28 = vector.shape_cast %27 : vector<1x8x1xf32> to vector<8x1xf32>
    %29 = arith.subf %25, %26 : vector<8x1xf32>
    %30 = math.exp %29 : vector<8x1xf32>
    %31 = arith.mulf %28, %30 : vector<8x1xf32>
    %32 = vector.broadcast %26 : vector<8x1xf32> to vector<8x512xf32>
    %33 = arith.subf %12, %32 : vector<8x512xf32>
    %34 = math.exp %33 : vector<8x512xf32>
    %cst_17 = arith.constant dense<0.000000e+00> : vector<8xf32>
    %35 = vector.multi_reduction <add>, %34, %cst_17 [1] : vector<8x512xf32> to vector<8xf32>
    %36 = vector.shape_cast %35 : vector<8xf32> to vector<8x1xf32>
    %37 = arith.addf %31, %36 : vector<8x1xf32>
    %c0_18 = arith.constant 0 : index
    %c0_19 = arith.constant 0 : index
    %c0_20 = arith.constant 0 : index
    %38 = vector.load %arg7[%c0_18, %c0_19, %c0_20] : memref<1x8x1xf32, #tpu.memory_space<vmem>>, vector<1x8x1xf32>
    %39 = vector.shape_cast %38 : vector<1x8x1xf32> to vector<8x1xf32>
    %40 = vector.shape_cast %37 : vector<8x1xf32> to vector<1x8x1xf32>
    tpu.vector_store %arg7[%c0_18, %c0_19, %c0_20], %40 {strides = array<i32>} : memref<1x8x1xf32, #tpu.memory_space<vmem>>, vector<1x8x1xf32>,
    %41 = arith.cmpf ogt, %14, %25 : vector<8x1xf32>
    %c0_21 = arith.constant 0 : index
    %c0_22 = arith.constant 0 : index
    %c0_23 = arith.constant 0 : index
    %42 = vector.load %arg6[%c0_21, %c0_22, %c0_23] : memref<1x8x1xi32, #tpu.memory_space<vmem>>, vector<1x8x1xi32>
    %43 = vector.shape_cast %42 : vector<1x8x1xi32> to vector<8x1xi32>
    %44 = arith.select %41, %23, %43 : vector<8x1xi1>, vector<8x1xi32>
    %c0_24 = arith.constant 0 : index
    %c0_25 = arith.constant 0 : index
    %c0_26 = arith.constant 0 : index
    %45 = vector.load %arg6[%c0_24, %c0_25, %c0_26] : memref<1x8x1xi32, #tpu.memory_space<vmem>>, vector<1x8x1xi32>
    %46 = vector.shape_cast %45 : vector<1x8x1xi32> to vector<8x1xi32>
    %47 = vector.shape_cast %44 : vector<8x1xi32> to vector<1x8x1xi32>
    tpu.vector_store %arg6[%c0_24, %c0_25, %c0_26], %47 {strides = array<i32>} : memref<1x8x1xi32, #tpu.memory_space<vmem>>, vector<1x8x1xi32>,
    %c0_27 = arith.constant 0 : index
    %c0_28 = arith.constant 0 : index
    %c0_29 = arith.constant 0 : index
    %48 = vector.load %arg5[%c0_27, %c0_28, %c0_29] : memref<1x8x1xf32, #tpu.memory_space<vmem>>, vector<1x8x1xf32>
    %49 = vector.shape_cast %48 : vector<1x8x1xf32> to vector<8x1xf32>
    %50 = vector.shape_cast %26 : vector<8x1xf32> to vector<1x8x1xf32>
    tpu.vector_store %arg5[%c0_27, %c0_28, %c0_29], %50 {strides = array<i32>} : memref<1x8x1xf32, #tpu.memory_space<vmem>>, vector<1x8x1xf32>,
    %c1 = arith.constant 1 : index
    %c0_30 = arith.constant 0 : index
    %c0_31 = arith.constant 0 : index
    %51 = vector.load %arg2[%c1, %c0_30, %c0_31] : memref<2x8x32xbf16, #tpu.memory_space<vmem>>, vector<1x8x32xbf16>
    %52 = vector.shape_cast %51 : vector<1x8x32xbf16> to vector<8x32xbf16>
    %c32 = arith.constant 32 : index
    %c0_32 = arith.constant 0 : index
    %53 = vector.load %arg3[%c32, %c0_32] : memref<64x512xbf16, #tpu.memory_space<vmem>>, vector<32x512xbf16>
    %c1_33 = arith.constant 1 : index
    %c0_34 = arith.constant 0 : index
    %54 = vector.load %arg4[%c1_33, %c0_34] : memref<2x512xf32, #tpu.memory_space<vmem>>, vector<1x512xf32>
    %cst_35 = arith.constant dense<0.000000e+00> : vector<8x512xf32>
    %55 = tpu.matmul %52, %53, %cst_35 {dimension_numbers = #tpu.dot_dimension_numbers<[1], [0], [0], [1], [0, 0, 1, 1], [], []>} : vector<8x32xbf16>, vector<32x512xbf16>, vector<8x512xf32> -> vector<8x512xf32>
    %56 = vector.broadcast %54 : vector<1x512xf32> to vector<8x512xf32>
    %57 = arith.addf %55, %56 : vector<8x512xf32>
    %cst_36 = arith.constant dense<0xFF800000> : vector<8xf32>
    %58 = vector.multi_reduction <maximumf>, %57, %cst_36 [1] : vector<8x512xf32> to vector<8xf32>
    %59 = vector.shape_cast %58 : vector<8xf32> to vector<8x1xf32>
    %60 = tpu.iota {dimensions = array<i32: 1>} : vector<8x512xi32>
    %61 = vector.broadcast %59 : vector<8x1xf32> to vector<8x512xf32>
    %62 = arith.cmpf oge, %57, %61 : vector<8x512xf32>
    %c512_i32_37 = arith.constant 512 : i32
    %63 = vector.broadcast %c512_i32_37 : i32 to vector<8x512xi32>
    %64 = arith.select %62, %60, %63 : vector<8x512xi1>, vector<8x512xi32>
    %cst_38 = arith.constant dense<2147483647> : vector<8xi32>
    %65 = vector.multi_reduction <minsi>, %64, %cst_38 [1] : vector<8x512xi32> to vector<8xi32>
    %66 = vector.shape_cast %65 : vector<8xi32> to vector<8x1xi32>
    %67 = vector.broadcast %5 : i32 to vector<8x1xi32>
    %68 = arith.addi %66, %67 : vector<8x1xi32>
    %c0_39 = arith.constant 0 : index
    %c0_40 = arith.constant 0 : index
    %c0_41 = arith.constant 0 : index
    %69 = vector.load %arg8[%c0_39, %c0_40, %c0_41] : memref<1x8x1xf32, #tpu.memory_space<vmem>>, vector<1x8x1xf32>
    %70 = vector.shape_cast %69 : vector<1x8x1xf32> to vector<8x1xf32>
    %71 = arith.maximumf %70, %59 : vector<8x1xf32>
    %c0_42 = arith.constant 0 : index
    %c0_43 = arith.constant 0 : index
    %c0_44 = arith.constant 0 : index
    %72 = vector.load %arg10[%c0_42, %c0_43, %c0_44] : memref<1x8x1xf32, #tpu.memory_space<vmem>>, vector<1x8x1xf32>
    %73 = vector.shape_cast %72 : vector<1x8x1xf32> to vector<8x1xf32>
    %74 = arith.subf %70, %71 : vector<8x1xf32>
    %75 = math.exp %74 : vector<8x1xf32>
    %76 = arith.mulf %73, %75 : vector<8x1xf32>
    %77 = vector.broadcast %71 : vector<8x1xf32> to vector<8x512xf32>
    %78 = arith.subf %57, %77 : vector<8x512xf32>
    %79 = math.exp %78 : vector<8x512xf32>
    %cst_45 = arith.constant dense<0.000000e+00> : vector<8xf32>
    %80 = vector.multi_reduction <add>, %79, %cst_45 [1] : vector<8x512xf32> to vector<8xf32>
    %81 = vector.shape_cast %80 : vector<8xf32> to vector<8x1xf32>
    %82 = arith.addf %76, %81 : vector<8x1xf32>
    %c0_46 = arith.constant 0 : index
    %c0_47 = arith.constant 0 : index
    %c0_48 = arith.constant 0 : index
    %83 = vector.load %arg10[%c0_46, %c0_47, %c0_48] : memref<1x8x1xf32, #tpu.memory_space<vmem>>, vector<1x8x1xf32>
    %84 = vector.shape_cast %83 : vector<1x8x1xf32> to vector<8x1xf32>
    %85 = vector.shape_cast %82 : vector<8x1xf32> to vector<1x8x1xf32>
    tpu.vector_store %arg10[%c0_46, %c0_47, %c0_48], %85 {strides = array<i32>} : memref<1x8x1xf32, #tpu.memory_space<vmem>>, vector<1x8x1xf32>,
    %86 = arith.cmpf ogt, %59, %70 : vector<8x1xf32>
    %c0_49 = arith.constant 0 : index
    %c0_50 = arith.constant 0 : index
    %c0_51 = arith.constant 0 : index
    %87 = vector.load %arg9[%c0_49, %c0_50, %c0_51] : memref<1x8x1xi32, #tpu.memory_space<vmem>>, vector<1x8x1xi32>
    %88 = vector.shape_cast %87 : vector<1x8x1xi32> to vector<8x1xi32>
    %89 = arith.select %86, %68, %88 : vector<8x1xi1>, vector<8x1xi32>
    %c0_52 = arith.constant 0 : index
    %c0_53 = arith.constant 0 : index
    %c0_54 = arith.constant 0 : index
    %90 = vector.load %arg9[%c0_52, %c0_53, %c0_54] : memref<1x8x1xi32, #tpu.memory_space<vmem>>, vector<1x8x1xi32>
    %91 = vector.shape_cast %90 : vector<1x8x1xi32> to vector<8x1xi32>
    %92 = vector.shape_cast %89 : vector<8x1xi32> to vector<1x8x1xi32>
    tpu.vector_store %arg9[%c0_52, %c0_53, %c0_54], %92 {strides = array<i32>} : memref<1x8x1xi32, #tpu.memory_space<vmem>>, vector<1x8x1xi32>,
    %c0_55 = arith.constant 0 : index
    %c0_56 = arith.constant 0 : index
    %c0_57 = arith.constant 0 : index
    %93 = vector.load %arg8[%c0_55, %c0_56, %c0_57] : memref<1x8x1xf32, #tpu.memory_space<vmem>>, vector<1x8x1xf32>
    %94 = vector.shape_cast %93 : vector<1x8x1xf32> to vector<8x1xf32>
    %95 = vector.shape_cast %71 : vector<8x1xf32> to vector<1x8x1xf32>
    tpu.vector_store %arg8[%c0_55, %c0_56, %c0_57], %95 {strides = array<i32>} : memref<1x8x1xf32, #tpu.memory_space<vmem>>, vector<1x8x1xf32>,
    return
  }
  func.func @transform_0(%arg0: i32, %arg1: i32) -> (i32, i32, i32) {
    %c0_i32 = arith.constant 0 : i32
    %c0_i32_0 = arith.constant 0 : i32
    %c0_i32_1 = arith.constant 0 : i32
    %c0_i32_2 = arith.constant 0 : i32
    return %c0_i32, %c0_i32_0, %c0_i32_1 : i32, i32, i32
  }
  func.func @transform_1(%arg0: i32, %arg1: i32) -> (i32, i32) {
    %c1_i32 = arith.constant 1 : i32
    %0 = arith.muli %arg0, %c1_i32 : i32
    %1 = arith.addi %0, %arg1 : i32
    %c0_i32 = arith.constant 0 : i32
    %c0_i32_0 = arith.constant 0 : i32
    return %c0_i32, %1 : i32, i32
  }
  func.func @transform_2(%arg0: i32, %arg1: i32) -> (i32, i32) {
    %c1_i32 = arith.constant 1 : i32
    %0 = arith.muli %arg0, %c1_i32 : i32
    %1 = arith.addi %0, %arg1 : i32
    %c0_i32 = arith.constant 0 : i32
    %c0_i32_0 = arith.constant 0 : i32
    return %c0_i32, %1 : i32, i32
  }
  func.func @transform_3(%arg0: i32, %arg1: i32) -> (i32, i32, i32) {
    %c0_i32 = arith.constant 0 : i32
    %c0_i32_0 = arith.constant 0 : i32
    %c0_i32_1 = arith.constant 0 : i32
    return %arg0, %c0_i32, %c0_i32_0 : i32, i32, i32
  }
  func.func @transform_4(%arg0: i32, %arg1: i32) -> (i32, i32, i32) {
    %c0_i32 = arith.constant 0 : i32
    %c0_i32_0 = arith.constant 0 : i32
    %c0_i32_1 = arith.constant 0 : i32
    return %arg0, %c0_i32, %c0_i32_0 : i32, i32, i32
  }
  func.func @transform_5(%arg0: i32, %arg1: i32) -> (i32, i32, i32) {
    %c0_i32 = arith.constant 0 : i32
    %c0_i32_0 = arith.constant 0 : i32
    %c0_i32_1 = arith.constant 0 : i32
    return %arg0, %c0_i32, %c0_i32_0 : i32, i32, i32
  }
  func.func @transform_6(%arg0: i32, %arg1: i32) -> (i32, i32, i32) {
    %c0_i32 = arith.constant 0 : i32
    %c0_i32_0 = arith.constant 0 : i32
    %c0_i32_1 = arith.constant 0 : i32
    return %arg0, %c0_i32, %c0_i32_0 : i32, i32, i32
  }
  func.func @transform_7(%arg0: i32, %arg1: i32) -> (i32, i32, i32) {
    %c0_i32 = arith.constant 0 : i32
    %c0_i32_0 = arith.constant 0 : i32
    %c0_i32_1 = arith.constant 0 : i32
    return %arg0, %c0_i32, %c0_i32_0 : i32, i32, i32
  }
  func.func @transform_8(%arg0: i32, %arg1: i32) -> (i32, i32, i32) {
    %c0_i32 = arith.constant 0 : i32
    %c0_i32_0 = arith.constant 0 : i32
    %c0_i32_1 = arith.constant 0 : i32
    return %arg0, %c0_i32, %c0_i32_0 : i32, i32, i32
  }
}

</mosaic_0001>

<bundles_post_ra>
// kernel: asr_ensemble_forward.1
= control target key start
LH: loop header
LB: loop body
LE: loop exit
PB: predicated region body
PF: predicated region fallthrough
CT: control target
= control target key end

     0   :  { %s1383_s27 = smov 0   ;;  %s1385_s28 = smov 0   ;;  %s1655_s0 = inlined_call_operand.vmem [shape: bf16[2,8,32], index: 0, kind: input, shape index: {}]   ;;  %s1656_s1 = inlined_call_operand.vmem [shape: bf16[64,1024], index: 1, kind: input, shape index: {}]   ;;  %s1657_s2 = inlined_call_operand.vmem [shape: f32[2,1024], index: 2, kind: input, shape index: {}]   ;;  %s1658_s3 = inlined_call_operand.vmem [shape: f32[2,8,1], index: 3, kind: output, shape index: {0}]   ;;  %s1659_s4 = inlined_call_operand.vmem [shape: s32[2,8,1], index: 4, kind: output, shape index: {1}]   ;;  %s1660_s5 = inlined_call_operand.vmem [shape: f32[2,8,1], index: 5, kind: output, shape index: {2}]   ;;  %s1661_s6 = inlined_call_operand.vmem [shape: f32[2,8,1], index: 6, kind: output, shape index: {3}]   ;;  %s1662_s7 = inlined_call_operand.vmem [shape: s32[2,8,1], index: 7, kind: output, shape index: {4}]   ;;  %s1663_s8 = inlined_call_operand.vmem [shape: f32[2,8,1], index: 8, kind: output, shape index: {5}]  }
   0x1   :  { %s1387_s29 = smov 0   ;;  %s1389_s30 = smov 0  }
   0x2   :  { %s1391_s9 = smov 0  }
   0x3 LB: > { %s31_s10 = sadd.s32 1, %s1329_s30  ;;  %p68_p1 = scmp.ne.s32.totalorder %s1321_s28, %s1317_s27  ;;  %s1333_s9 = sphi %s1391_s9, %s19_s9   ;;  %s1329_s30 = sphi %s1389_s30, %s1667_s30   ;;  %s1325_s29 = sphi %s1387_s29, %s1666_s29   ;;  %s1321_s28 = sphi %s1385_s28, %s1665_s28   ;;  %s1317_s27 = sphi %s1383_s27, %s1664_s27  }
   0x4   : > { %p33_p0 = scmp.ge.s32.totalorder %s31_s10, 2  ;;  %p69_p2 = scmp.eq.s32.totalorder %s1333_s9, 0 }
   0x5   : > { %s61_s12 = sadd.s32 1, %s1321_s28  ;;  %p1166_p5 = scmp.ge.s32.totalorder %s1333_s9, 2 }
   0x6   : > { %s1669_s10 = smov (%p33_p0, %s31_s10), 0  ;;  %p70_p3 = por %p69_p2, %p68_p1 }
   0x7   : > { %s58_s11 = ssub.s32 %s1329_s30, %s1669_s10  ;;  %281 = sbr.rel (%p1166_p5) target bundleno = 26 (0x1a), region = 20 }
   0x8   : > { %p59_p4 = scmp.eq.s32.totalorder %s58_s11, 0 }
   0xa   : > { %s1418_s13 = scalar_select %p59_p4, %s1321_s28, %s61_s12  }
   0xe   : > { %284 = sbr.rel (!%p70_p3) target bundleno = 26 (0x1a), region = 24  ;;  %s286_s14 = sand.u32 (%p70_p3), 1, %s1321_s28  }
   0xf   : > { %s1205_s15 = sshll.u32 (%p70_p3), %s1329_s30, 4  ;;  %s1167_s16 = sshll.u32 (%p70_p3), %s286_s14, 7 }
  0x10   : > { %s1426_s19 = scalar_lea.vmem (%p70_p3), %s1656_s1, %s1205_s15  ;;  %s288_s20 = scalar_lea.vmem (%p70_p3), [#allocation2], %s1167_s16 }
  0x11   : > { %v305_v0 = vld [vmem:[%s1426_s19] sm:$0xff] (%p70_p3)  ;;  %v307_v1 = vld [vmem:[%s1426_s19 + $0x8] sm:$0xff] (%p70_p3) }
  0x12   : > { %v309_v2 = vld [vmem:[%s1426_s19 + $0x20] sm:$0xff] (%p70_p3)  ;;  %306 = vst [vmem:[%s288_s20] sm:$0xff] (%p70_p3), %v305_v0  ;;  %308 = vst [vmem:[%s288_s20 + $0x8] sm:$0xff] (%p70_p3), %v307_v1  ;;  %v311_v3 = vld [vmem:[%s1426_s19 + $0x28] sm:$0xff] (%p70_p3) }
  0x13   : > { %310 = vst [vmem:[%s288_s20 + $0x10] sm:$0xff] (%p70_p3), %v309_v2  ;;  %v313_v4 = vld [vmem:[%s1426_s19 + $0x40] sm:$0xff] (%p70_p3)  ;;  %v315_v5 = vld [vmem:[%s1426_s19 + $0x48] sm:$0xff] (%p70_p3)  ;;  %312 = vst [vmem:[%s288_s20 + $0x18] sm:$0xff] (%p70_p3), %v311_v3 }
  0x14   : > { %314 = vst [vmem:[%s288_s20 + $0x20] sm:$0xff] (%p70_p3), %v313_v4  ;;  %316 = vst [vmem:[%s288_s20 + $0x28] sm:$0xff] (%p70_p3), %v315_v5  ;;  %v317_v6 = vld [vmem:[%s1426_s19 + $0x60] sm:$0xff] (%p70_p3)  ;;  %v319_v7 = vld [vmem:[%s1426_s19 + $0x68] sm:$0xff] (%p70_p3) }
  0x15   : > { %v321_v8 = vld [vmem:[%s1426_s19 + $0x80] sm:$0xff]  ;;  %318 = vst [vmem:[%s288_s20 + $0x30] sm:$0xff] %v317_v6  ;;  %320 = vst [vmem:[%s288_s20 + $0x38] sm:$0xff] %v319_v7  ;;  %v323_v9 = vld [vmem:[%s1426_s19 + $0x88] sm:$0xff] }
  0x16   : > { %322 = vst [vmem:[%s288_s20 + $0x40] sm:$0xff] %v321_v8  ;;  %v325_v10 = vld [vmem:[%s1426_s19 + $0xa0] sm:$0xff]  ;;  %v327_v11 = vld [vmem:[%s1426_s19 + $0xa8] sm:$0xff]  ;;  %324 = vst [vmem:[%s288_s20 + $0x48] sm:$0xff] %v323_v9 }
  0x17   : > { %326 = vst [vmem:[%s288_s20 + $0x50] sm:$0xff] %v325_v10  ;;  %328 = vst [vmem:[%s288_s20 + $0x58] sm:$0xff] %v327_v11  ;;  %v329_v12 = vld [vmem:[%s1426_s19 + $0xc0] sm:$0xff]  ;;  %v331_v13 = vld [vmem:[%s1426_s19 + $0xc8] sm:$0xff] }
  0x18   : > { %v333_v14 = vld [vmem:[%s1426_s19 + $0xe0] sm:$0xff]  ;;  %330 = vst [vmem:[%s288_s20 + $0x60] sm:$0xff] %v329_v12  ;;  %332 = vst [vmem:[%s288_s20 + $0x68] sm:$0xff] %v331_v13  ;;  %v335_v15 = vld [vmem:[%s1426_s19 + $0xe8] sm:$0xff] }
  0x19   : > { %334 = vst [vmem:[%s288_s20 + $0x70] sm:$0xff] %v333_v14  ;;  %336 = vst [vmem:[%s288_s20 + $0x78] sm:$0xff] %v335_v15 }
  0x1a PF: > { %p1170_p6 = scmp.ge.s32.totalorder %s1333_s9, 1  ;;  %p352_p7 = scmp.lt.s32.totalorder %s1333_s9, 3 }
  0x1c   : > { %p353_p8 = pnand %p1170_p6, %p352_p7 }
  0x1d   : > { %s359_s21 = sand.u32 (!%p353_p8), 1, %s1317_s27   ;;  %v1335_v16 = vmov (!%p353_p8), 0   ;;  %v466_v25 = vld [vmem:[%s1655_s0] sm:$0xf] (!%p353_p8)  ;;  %vm537_vm0 = vcmask (!%p353_p8), 261120   ;;  %s1172_s11 = sshll.u32 (!%p353_p8), %s1325_s29, 2  ;;  %v477_v35 = vlaneseq (!%p353_p8) }
  0x1e   : > { %356 = sbr.rel (%p353_p8) target bundleno = 745 (0x2e9), region = 51  ;;  %s1171_s22 = sshll.u32 (!%p353_p8), %s359_s21, 7  ;;  %573 = vmatprep.mubr.bf16.mxu0 (!%p353_p8), %v1335_v16  ;;  %614 = vmatprep.mubr.bf16.mxu1 (!%p353_p8), %v1335_v16  ;;  %v1191_v34 = vld [vmem:[%s1655_s0 + $0x4] sm:$0xf] (!%p353_p8)  ;;  %vm456_vm1 = vcmask (!%p353_p8), 7168  }
  0x1f   : > { %1249 = vset.pattern.permute.xlu1 (!%p353_p8), %v1335_v16  ;;  %1250 = vset.pattern.permute.xlu0 (!%p353_p8), %v1335_v16  ;;  %s1451_s23 = scalar_lea.vmem (!%p353_p8), [#allocation2], %s1171_s22  ;;  %p421_p9 = scmp.lt.s32.totalorder (!%p353_p8), %s1172_s11, 7  ;;  %v478_v36 = vshrl.u32 (!%p353_p8), %v477_v35, 7 }
  0x20   : > { %v1251_v17 = vld [vmem:[%s1451_s23 + $0x4] ss:$16 sps:$4 sm:$0xff] (!%p353_p8)   ;;  %v1253_v18 = vld [vmem:[%s1451_s23 + $0xc] ss:$16 sps:$4 sm:$0xff] (!%p353_p8)   ;;  %v1255_v19 = vld [vmem:[%s1451_s23] ss:$16 sps:$4 sm:$0xff] (!%p353_p8)  }
  0x21   : > { %541 = vmatprep.subr.bf16.mxu0 (!%p353_p8), %v1251_v17  ;;  %v1256_v20 = vld [vmem:[%s1451_s23 + $0x8] ss:$16 sps:$4 sm:$0xff] (!%p353_p8)   ;;  %582 = vmatprep.subr.bf16.mxu1 (!%p353_p8), %v1253_v18  ;;  %v1257_v21 = vld [vmem:[%s1451_s23 + $0x24] ss:$16 sps:$4 sm:$0xff] (!%p353_p8)   ;;  %v1259_v22 = vld [vmem:[%s1451_s23 + $0x2c] ss:$16 sps:$4 sm:$0xff] (!%p353_p8)  }
  0x22   : > { %542 = vmatpush1.bf16.msra.mxu0 (!%p353_p8), %v1255_v19  ;;  %583 = vmatpush1.bf16.msra.mxu1 (!%p353_p8), %v1256_v20  ;;  %v1261_v23 = vld [vmem:[%s1451_s23 + $0x20] ss:$16 sps:$4 sm:$0xff] (!%p353_p8)   ;;  %v1262_v24 = vld [vmem:[%s1451_s23 + $0x28] ss:$16 sps:$4 sm:$0xff] (!%p353_p8)   ;;  %v1265_v26 = vld [vmem:[%s1451_s23 + $0x44] ss:$16 sps:$4 sm:$0xff] (!%p353_p8)  }
  0x23   : > { %543 = vmatprep.subr.bf16.mxu0 (!%p353_p8), %v1257_v21  ;;  %584 = vmatprep.subr.bf16.mxu1 (!%p353_p8), %v1259_v22  ;;  %v1263_v27 = vld [vmem:[%s1451_s23 + $0x40] ss:$16 sps:$4 sm:$0xff] (!%p353_p8)   ;;  %v1268_v28 = vld [vmem:[%s1451_s23 + $0x4c] ss:$16 sps:$4 sm:$0xff] (!%p353_p8)   ;;  %v1266_v29 = vld [vmem:[%s1451_s23 + $0x48] ss:$16 sps:$4 sm:$0xff] (!%p353_p8)  }
  0x24   : > { %v1271_v30 = vld [vmem:[%s1451_s23 + $0x64] ss:$16 sps:$4 sm:$0xff] (!%p353_p8)   ;;  %v1274_v31 = vld [vmem:[%s1451_s23 + $0x6c] ss:$16 sps:$4 sm:$0xff] (!%p353_p8)   ;;  %v1269_v32 = vld [vmem:[%s1451_s23 + $0x60] ss:$16 sps:$4 sm:$0xff] (!%p353_p8)  }
  0x25   : > { %v1272_v33 = vld [vmem:[%s1451_s23 + $0x68] ss:$16 sps:$4 sm:$0xff]   ;;  %s1671_s11 = smov (!%p421_p9, %s1172_s11), 7  ;;  %v479_v37 = vsub.s32 0, %v478_v36  ;;  %v487_v38 = vsub.s32 2, %v478_v36  ;;  %v483_v40 = vsub.s32 1, %v478_v36 }
  0x26   : > { %544 = vmatpush1.bf16.msra.mxu0 %v1261_v23  ;;  %585 = vmatpush1.bf16.msra.mxu1 %v1262_v24  ;;  %s1173_s12 = sshll.u32 %s1671_s11, 1  ;;  %v491_v41 = vsub.s32 3, %v478_v36  ;;  %p427_p10 = scmp.lt.s32.totalorder %s1325_s29, 1  ;;  %v1336_v18 = vmov -inf   ;;  %v1337_v19 = vmov 0.0   ;;  %v629_v20 = vand.u32 127, %v477_v35 }
  0x27   : > { %776 = vmatprep.subr.bf16.mxu0 %v1265_v26  ;;  %817 = vmatprep.subr.bf16.mxu1 %v1268_v28  ;;  %s424_s16 = scalar_lea.vmem %s1657_s2, %s1173_s12 }
  0x28   : > { %v475_v39 = vld [vmem:[%s424_s16] ss:$2 sm:$0xf]  ;;  %v1192_v56 = vld [vmem:[%s424_s16 + $0x1] ss:$2 sm:$0xf] }
  0x29   : > { %1189 = vmatmul.mubr.msk.bf16.vlgmr.msra.gmra.mrb[0].mxu0 %vm537_vm0, %v466_v25  ;;  %1190 = vmatmul.mubr.msk.bf16.vlgmr.msra.gmra.mrb[0].mxu1 %vm537_vm0, %v466_v25  ;;  %v480_v42 = vrot.slane %v475_v39, %v479_v37  ;;  %v488_v43 = vrot.slane %v475_v39, %v487_v38  ;;  %v484_v44 = vrot.slane %v475_v39, %v483_v40  ;;  %s428_s17 = scalar_select %p427_p10, %s1325_s29, 1  ;;  %v630_v22 = vadd.s32 128, %v629_v20 }
  0x2a   : > { %777 = vmatpush1.bf16.msra.mxu0 %v1263_v27  ;;  %818 = vmatpush1.bf16.msra.mxu1 %v1266_v29  ;;  %v492_v45 = vrot.slane %v475_v39, %v491_v41  ;;  %v716_v61 = vrot.slane %v1192_v56, %v479_v37  ;;  %v724_v62 = vrot.slane %v1192_v56, %v487_v38  ;;  %v631_v23 = vadd.s32 256, %v629_v20 }
  0x2b   : > { %778 = vmatprep.subr.bf16.mxu0 %v1271_v30  ;;  %819 = vmatprep.subr.bf16.mxu1 %v1274_v31  ;;  %v720_v0 = vrot.slane %v1192_v56, %v483_v40  ;;  %v728_v1 = vrot.slane %v1192_v56, %v491_v41  ;;  %s1512_s18 = sshll.u32 %s428_s17, 3  ;;  %v632_v24 = vadd.s32 384, %v629_v20 }
  0x2c   : > { %808 = vmatprep.mubr.bf16.mxu0 %v1335_v16  ;;  %849 = vmatprep.mubr.bf16.mxu1 %v1335_v16  ;;  %s430_s21 = scalar_lea.vmem %s1658_s3, %s1512_s18  ;;  %s1523_s24 = scalar_lea.vmem %s1661_s6, %s1512_s18 }
  0x2d   : > { %457 = vst.msk [vmem:[%s430_s21] sm:$0xff] %vm456_vm1, %v1336_v18  ;;  %460 = vst.msk [vmem:[%s1523_s24] sm:$0xff] %vm456_vm1, %v1336_v18  ;;  %s1531_s27 = scalar_lea.vmem %s1660_s5, %s1512_s18  ;;  %s1539_s14 = scalar_lea.vmem %s1663_s8, %s1512_s18 }
  0x2e   : > { %779 = vmatpush1.bf16.msra.mxu0 %v1269_v32  ;;  %820 = vmatpush1.bf16.msra.mxu1 %v1272_v33  ;;  %459 = vst.msk [vmem:[%s1531_s27] sm:$0xff] %vm456_vm1, %v1337_v19  ;;  %462 = vst.msk [vmem:[%s1539_s14] sm:$0xff] %vm456_vm1, %v1337_v19  ;;  %s1594_s17 = scalar_lea.vmem %s1659_s4, %s1512_s18 }
  0x2f   : > { %458 = vst.msk [vmem:[%s1594_s17] sm:$0xff] %vm456_vm1, %v1335_v16 }
  0x31   : > { %1201 = vmatmul.mubr.msk.bf16.vlgmr.msra.gmra.mrb[4].mxu0 %vm537_vm0, %v1191_v34  ;;  %1202 = vmatmul.mubr.msk.bf16.vlgmr.msra.gmra.mrb[4].mxu1 %vm537_vm0, %v1191_v34 }
  0x34   : > { %v1544_v21 = vld [vmem:[%s430_s21] sm:$0xff] }
  0x35   : > { %v1568_v34 = vld [vmem:[%s1523_s24] sm:$0xff] }
  0xfc   : > { %v575_v46 = vpop.f32.mrb[0].mxu0  ;;  %v616_v47 = vpop.f32.mrb[0].mxu1 }
  0xfd   : > { %v1486_v48 = vadd.f32 %v575_v46, %v480_v42  ;;  %v1488_v49 = vadd.f32 %v616_v47, %v488_v43  ;;  %v577_v50 = vpop.f32.mrb[1].mxu0  ;;  %v618_v51 = vpop.f32.mrb[1].mxu1 }
  0xfe   : > { %v1490_v52 = vadd.f32 %v577_v50, %v484_v44  ;;  %v1492_v53 = vadd.f32 %v618_v51, %v492_v45  ;;  %v579_v54 = vpop.f32.mrb[2].mxu0  ;;  %v620_v55 = vpop.f32.mrb[2].mxu1 }
  0xff   : > { %v580_v57 = vpop.f32.mrb[3].mxu0  ;;  %v621_v58 = vpop.f32.mrb[3].mxu1 }
 0x100   : > { %v623_v59 = vmax.f32 %v1486_v48, %v1490_v52  ;;  %v624_v60 = vmax.f32 %v1488_v49, %v1492_v53 }
 0x102   : > { %v625_v63 = vmax.f32 %v623_v59, %v624_v60 }
 0x104   : > { %v810_v2 = vpop.f32.mrb[4].mxu0  ;;  %v851_v3 = vpop.f32.mrb[4].mxu1  ;;  %626 = vmax.xlane.f32.xlu0 %v625_v63 }
 0x105   : > { %v1499_v4 = vadd.f32 %v810_v2, %v716_v61  ;;  %v1501_v5 = vadd.f32 %v851_v3, %v724_v62  ;;  %v812_v6 = vpop.f32.mrb[5].mxu0  ;;  %v853_v7 = vpop.f32.mrb[5].mxu1 }
 0x106   : > { %v1503_v8 = vadd.f32 %v812_v6, %v720_v0  ;;  %v1505_v9 = vadd.f32 %v853_v7, %v728_v1  ;;  %v814_v10 = vpop.f32.mrb[6].mxu0  ;;  %v855_v11 = vpop.f32.mrb[6].mxu1 }
 0x107   : > { %v815_v12 = vpop.f32.mrb[7].mxu0  ;;  %v856_v13 = vpop.f32.mrb[7].mxu1 }
 0x108   : > { %v858_v14 = vmax.f32 %v1499_v4, %v1503_v8  ;;  %v859_v15 = vmax.f32 %v1501_v5, %v1505_v9 }
 0x10a   : > { %v860_v17 = vmax.f32 %v858_v14, %v859_v15 }
 0x10c   : > { %861 = vmax.xlane.f32.xlu0 %v860_v17 }
 0x191   : > { %v1546_v25 = vpop.xlane.xlu0 %626 }
 0x192   : > { %v1550_v26 = vmax.f32 %v1544_v21, %v1546_v25  ;;  %vm633_vm2 = vcmp.ge.f32.partialorder %v1486_v48, %v1546_v25  ;;  %vm634_vm3 = vcmp.ge.f32.partialorder %v1490_v52, %v1546_v25  ;;  %vm635_vm4 = vcmp.ge.f32.partialorder %v1488_v49, %v1546_v25 }
 0x193   : > { %vm636_vm5 = vcmp.ge.f32.partialorder %v1492_v53, %v1546_v25  ;;  %v637_v27 = vsel %vm633_vm2, %v629_v20, 512  ;;  %v638_v28 = vsel %vm634_vm3, %v630_v22, 512  ;;  %v639_v29 = vsel %vm635_vm4, %v631_v23, 512 }
 0x194   : > { %672 = vperm.xlu1 %1249, %v1550_v26   ;;  %v666_v30 = vsub.f32 %v1544_v21, %v1550_v26  ;;  %699 = vst.msk [vmem:[%s430_s21] sm:$0xff] %vm456_vm1, %v1550_v26  ;;  %v640_v31 = vsel %vm636_vm5, %v632_v24, 512  ;;  %vm641_vm6 = vcmp.lt.s32.totalorder %v637_v27, %v638_v28  ;;  %vm695_vm7 = vcmp.gt.f32.partialorder %v1546_v25, %v1544_v21  ;;  %s1610_s21 = scalar_lea.vmem %s1662_s7, %s1512_s18  ;;  %s1180_s18 = sshll.u32 %s1325_s29, 9  ;;  %v665_v25 = vld [vmem:[%s1531_s27] sm:$0xff] }
 0x195   : > { %v642_v32 = vsel %vm641_vm6, %v637_v27, %v638_v28  ;;  %vm643_vm8 = vcmp.lt.s32.totalorder %v639_v29, %v640_v31  ;;  %461 = vst.msk [vmem:[%s1610_s21] sm:$0xff] %vm456_vm1, %v1335_v16 }
 0x196   : > { %v644_v33 = vsel %vm643_vm8, %v639_v29, %v640_v31 }
 0x197   : > { %vm645_vm9 = vcmp.lt.s32.totalorder %v642_v32, %v644_v33 }
 0x198   : > { %v646_v35 = vsel %vm645_vm9, %v642_v32, %v644_v33 }
 0x199   : > { %v1570_v36 = vpop.xlane.xlu0 %861  ;;  %v648_v37 = vshra.s32 %v646_v35, 16  ;;  %v647_v54 = vand.u32 65535, %v646_v35  ;;  %v661_v35 = vstv %s1180_s18 }
 0x19a   : > { %v1574_v38 = vmax.f32 %v1568_v34, %v1570_v36  ;;  %vm863_vm10 = vcmp.ge.f32.partialorder %v1499_v4, %v1570_v36  ;;  %vm864_vm11 = vcmp.ge.f32.partialorder %v1503_v8, %v1570_v36  ;;  %vm865_vm12 = vcmp.ge.f32.partialorder %v1501_v5, %v1570_v36 }
 0x19b   : > { %v650_v39 = vcvt.s32.f32 %v648_v37  ;;  %vm866_vm13 = vcmp.ge.f32.partialorder %v1505_v9, %v1570_v36  ;;  %v867_v41 = vsel %vm863_vm10, %v629_v20, 512  ;;  %v868_v42 = vsel %vm864_vm11, %v630_v22, 512 }
 0x19c   : > { %901 = vperm.xlu1 %1249, %v1574_v38   ;;  %v895_v40 = vsub.f32 %v1568_v34, %v1574_v38  ;;  %927 = vst.msk [vmem:[%s1523_s24] sm:$0xff] %vm456_vm1, %v1574_v38  ;;  %v869_v43 = vsel %vm865_vm12, %v631_v23, 512  ;;  %v870_v44 = vsel %vm866_vm13, %v632_v24, 512  ;;  %vm871_vm14 = vcmp.lt.s32.totalorder %v867_v41, %v868_v42  ;;  %v924_v26 = vld [vmem:[%s1610_s21] sm:$0xff] }
 0x19d   : > { %651 = vmin.xlane.f32.xlu0 %v650_v39  ;;  %vm873_vm15 = vcmp.lt.s32.totalorder %v869_v43, %v870_v44  ;;  %v872_v45 = vsel %vm871_vm14, %v867_v41, %v868_v42  ;;  %v649_v56 = vcvt.s32.f32 %v647_v54  ;;  %vm923_vm4 = vcmp.gt.f32.partialorder %v1570_v36, %v1568_v34 }
 0x19e   : > { %v874_v46 = vsel %vm873_vm15, %v869_v43, %v870_v44  ;;  %v667_v43 = vmul.f32 1.442695, %v666_v30  ;;  %v896_v44 = vmul.f32 1.442695, %v895_v40 }
 0x19f   : > { %vm875_vm0 = vcmp.lt.s32.totalorder %v872_v45, %v874_v46 }
 0x1a0   : > { %v876_v47 = vsel %vm875_vm0, %v872_v45, %v874_v46 }
 0x1a1   : > { %v878_v50 = vshra.s32 %v876_v47, 16  ;;  %v877_v11 = vand.u32 65535, %v876_v47 }
 0x1a3   : > { %v880_v51 = vcvt.s32.f32 %v878_v50  ;;  %v879_v18 = vcvt.s32.f32 %v877_v11 }
 0x1c0   : > { %881 = vmin.xlane.f32.xlu1 %v880_v51 }
 0x213   : > { %v673_v58 = vpop.permute.xlu1 %672 }
 0x214   : > { %v675_v59 = vsub.f32 %v1486_v48, %v673_v58  ;;  %v676_v60 = vsub.f32 %v1490_v52, %v673_v58  ;;  %v677_v2 = vsub.f32 %v1488_v49, %v673_v58  ;;  %v678_v7 = vsub.f32 %v1492_v53, %v673_v58 }
 0x216   : > { %v679_v62 = vmul.f32 1.442695, %v675_v59  ;;  %v681_v0 = vmul.f32 1.442695, %v676_v60  ;;  %v683_v10 = vmul.f32 1.442695, %v677_v2 }
 0x217   : > { %v685_v52 = vmul.f32 1.442695, %v678_v7 }
 0x218   : > { %1275 = vpow2.f32 %v679_v62 }
 0x219   : > { %1277 = vpow2.f32 %v681_v0 }
 0x21b   : > { %v902_v61 = vpop.permute.xlu1 %901 }
 0x21c   : > { %v904_v63 = vsub.f32 %v1499_v4, %v902_v61  ;;  %v905_v1 = vsub.f32 %v1503_v8, %v902_v61  ;;  %v906_v48 = vsub.f32 %v1501_v5, %v902_v61  ;;  %v907_v49 = vsub.f32 %v1505_v9, %v902_v61 }
 0x21e   : > { %v908_v3 = vmul.f32 1.442695, %v904_v63  ;;  %v910_v6 = vmul.f32 1.442695, %v905_v1  ;;  %v912_v4 = vmul.f32 1.442695, %v906_v48 }
 0x21f   : > { %v914_v5 = vmul.f32 1.442695, %v907_v49 }
 0x220   : > { %1279 = vpow2.f32 %v908_v3 }
 0x221   : > { %1281 = vpow2.f32 %v910_v6 }
 0x222   : > { %1283 = vpow2.f32 %v683_v10  ;;  %v1276_v53 = vpop.eup %1275 }
 0x223   : > { %1285 = vpow2.f32 %v685_v52  ;;  %v1278_v8 = vpop.eup %1277 }
 0x224   : > { %1287 = vpow2.f32 %v912_v4  ;;  %v687_v13 = vadd.f32 %v1278_v8, %v1276_v53 }
 0x225   : > { %1289 = vpow2.f32 %v914_v5 }
 0x226   : > { %1291 = vpow2.f32 %v667_v43 }
 0x227   : > { %1293 = vpow2.f32 %v896_v44 }
 0x22a   : > { %v652_v55 = vpop.xlane.xlu0 %651  ;;  %v1280_v12 = vpop.eup %1279 }
 0x22b   : > { %vm653_vm2 = vcmp.eq.f32.partialorder %v650_v39, %v652_v55  ;;  %v1282_v14 = vpop.eup %1281  ;;  %v658_v29 = vcvt.f32.s32 %v652_v55  ;;  %v696_v39 = vld [vmem:[%s1594_s17] sm:$0xff] }
 0x22c   : > { %v654_v57 = vsel %vm653_vm2, %v649_v56, inf  ;;  %v1284_v15 = vpop.eup %1283  ;;  %v916_v19 = vadd.f32 %v1282_v14, %v1280_v12  ;;  %v894_v56 = vld [vmem:[%s1539_s14] sm:$0xff] }
 0x22d   : > { %655 = vmin.xlane.f32.xlu0 %v654_v57  ;;  %v688_v9 = vadd.f32 %v1284_v15, %v687_v13  ;;  %v1286_v22 = vpop.eup %1285  ;;  %v659_v32 = vshll.u32 %v658_v29, 16 }
 0x22e   : > { %v1288_v16 = vpop.eup %1287 }
 0x22f   : > { %v689_v23 = vadd.f32 %v1286_v22, %v688_v9  ;;  %v917_v24 = vadd.f32 %v1288_v16, %v916_v19  ;;  %v1290_v27 = vpop.eup %1289 }
 0x230   : > { %v1292_v46 = vpop.eup %1291 }
 0x231   : > { %v918_v28 = vadd.f32 %v1290_v27, %v917_v24  ;;  %v669_v55 = vmul.f32 %v1292_v46, %v665_v25  ;;  %v1294_v21 = vpop.eup %1293 }
 0x232   : > { %v898_v40 = vmul.f32 %v1294_v21, %v894_v56 }
 0x24d   : > { %v882_v17 = vpop.xlane.xlu1 %881 }
 0x24e   : > { %vm883_vm3 = vcmp.eq.f32.partialorder %v880_v51, %v882_v17  ;;  %v888_v45 = vcvt.f32.s32 %v882_v17 }
 0x24f   : > { %v884_v20 = vsel %vm883_vm3, %v879_v18, inf }
 0x250   : > { %885 = vmin.xlane.f32.xlu0 %v884_v20  ;;  %v889_v50 = vshll.u32 %v888_v45, 16 }
 0x254   : > { %690 = vadd.xlane.f32.xlu0 %v689_v23 }
 0x258   : > { %919 = vadd.xlane.f32.xlu0 %v918_v28 }
 0x2ba   : > { %v656_v31 = vpop.xlane.xlu0 %655 }
 0x2bb   : > { %v657_v33 = vcvt.f32.s32 %v656_v31 }
 0x2bd   : > { %v660_v37 = vadd.s32 %v659_v32, %v657_v33 }
 0x2bf   : > { %v662_v41 = vadd.s32 %v661_v35, %v660_v37 }
 0x2c1   : > { %v697_v42 = vsel %vm695_vm7, %v662_v41, %v696_v39 }
 0x2c2   : > { %698 = vst.msk [vmem:[%s1594_s17] sm:$0xff] %vm456_vm1, %v697_v42 }
 0x2dd   : > { %v886_v47 = vpop.xlane.xlu0 %885 }
 0x2de   : > { %v887_v51 = vcvt.f32.s32 %v886_v47 }
 0x2e0   : > { %v890_v54 = vadd.s32 %v889_v50, %v887_v51 }
 0x2e1   : > { %v691_v30 = vpop.xlane.xlu0 %690 }
 0x2e2   : > { %v891_v57 = vadd.s32 %v890_v54, %v661_v35  ;;  %v692_v58 = vadd.f32 %v691_v30, %v669_v55 }
 0x2e4   : > { %v925_v38 = vsel %vm923_vm4, %v891_v57, %v924_v26  ;;  %694 = vst.msk [vmem:[%s1531_s27] sm:$0xff] %vm456_vm1, %v692_v58 }
 0x2e5   : > { %926 = vst.msk [vmem:[%s1610_s21] sm:$0xff] %vm456_vm1, %v925_v38  ;;  %v920_v59 = vpop.xlane.xlu0 %919 }
 0x2e6   : > { %v921_v60 = vadd.f32 %v920_v59, %v898_v40 }
 0x2e8   : > { %922 = vst.msk [vmem:[%s1539_s14] sm:$0xff] %vm456_vm1, %v921_v60 }
 0x2e9 PF: > { %s19_s9 = sadd.s32 1, %s1333_s9   ;;  %s1664_s27 = smov %s1321_s28 }
 0x2ea   : > { %p16_p11 = scmp.ge.s32.totalorder %s19_s9, 4   ;;  %s1665_s28 = smov %s1418_s13 }
 0x2eb   : > { %s1666_s29 = smov %s1329_s30  ;;  %s1667_s30 = smov %s1669_s10 }
 0x2ec   :  { %18 = sbr.rel (!%p16_p11) target bundleno = 3 (0x3), region = 159 }

</bundles_post_ra>
